<compile_context>
chip_gen: v7x
topology: tpu7x:2x2x1
jax: 0.10.0
libtpu: 0.0.40
codegen_flags: <defaults>
</compile_context>

<pallas_src>
import functools

import jax
import jax.numpy as jnp
from jax.experimental import pallas as pl
from jax.experimental.pallas import tpu as pltpu


# --------------------------------------------------------------------------- #
# Kernels
# --------------------------------------------------------------------------- #

def _head_kernel_single(x_ref, wd_ref, bd_ref, wo_ref, bo_ref, out_ref):
    """Fast path: whole (H, H) dense weight resident in VMEM, grid=(1,)."""
    # x_ref : (B, H)  CLS-token features
    # wd_ref: (H, H)  dense weight (in, out)
    # bd_ref: (1, H)  dense bias
    # wo_ref: (1, H)  out_proj weight as a lane-dense row
    # bo_ref: (1, 1)  out_proj bias
    # out_ref: (B, 1) logits
    h = jnp.dot(x_ref[...], wd_ref[...], preferred_element_type=jnp.float32)
    h = jnp.tanh(h + bd_ref[...].astype(jnp.float32))
    logits = jnp.sum(h * wo_ref[...].astype(jnp.float32), axis=-1, keepdims=True)
    out_ref[...] = (logits + bo_ref[...].astype(jnp.float32)).astype(out_ref.dtype)


def _head_kernel_stream(x_ref, wd_ref, bd_ref, wo_ref, part_ref, acc_ref):
    """Streaming path: dense-weight columns streamed in TN chunks.

    Grid = (num_core_splits ['parallel'], steps ['arbitrary']). Each split
    accumulates its own (B, 1) f32 partial logit; out_proj bias is added in the
    wrapper when the partials are summed.
    """
    # x_ref : (B, H)    CLS-token features (resident across the grid)
    # wd_ref: (H, TN)   dense weight column chunk
    # bd_ref: (1, TN)   dense bias chunk
    # wo_ref: (1, TN)   out_proj weight chunk (lane-dense row)
    # part_ref: (1, B, 1) per-split partial logits (f32)
    # acc_ref : (B, 1)  f32 accumulator (VMEM scratch, per-core)
    n = pl.program_id(1)

    @pl.when(n == 0)
    def _():
        acc_ref[...] = jnp.zeros_like(acc_ref)

    # dense chunk on the MXU: (B, H) @ (H, TN) -> (B, TN), f32 accumulation.
    # (pass precision=jax.lax.Precision.HIGHEST here if bit-parity with a f32
    #  torch Linear is ever required; the kernel is memory-bound so it is free.)
    h = jnp.dot(x_ref[...], wd_ref[...], preferred_element_type=jnp.float32)
    h = jnp.tanh(h + bd_ref[...].astype(jnp.float32))

    # out_proj partial over this TN chunk: VPU multiply + lane reduce.
    acc_ref[...] += jnp.sum(h * wo_ref[...].astype(jnp.float32),
                            axis=-1, keepdims=True)

    @pl.when(n == pl.num_programs(1) - 1)
    def _():
        part_ref[0] = acc_ref[...]


# --------------------------------------------------------------------------- #
# Configuration helpers
# --------------------------------------------------------------------------- #

def _vmem_budget_bytes():
    """Generation-aware VMEM budget (leaves headroom for Mosaic internals)."""
    kind = ""
    try:
        kind = jax.devices()[0].device_kind.lower()
    except Exception:  # pragma: no cover - non-TPU tracing environments
        pass
    # v7x: 64 MiB physical per TensorCore; v5e/v6e (and older): 128 MiB.
    phys = (64 << 20) if "v7" in kind else (128 << 20)
    return int(phys * 0.65)


def _default_core_splits():
    """2-way column split on dual-TensorCore chips (v7x); 1 elsewhere."""
    try:
        kind = jax.devices()[0].device_kind.lower()
    except Exception:  # pragma: no cover
        return 1
    return 2 if "v7" in kind else 1


def _choose_tn(H, B, wd_itemsize, x_itemsize, budget):
    """Largest 128-multiple divisor of H whose pipelined tiles fit the budget."""
    # Resident CLS block (conservatively counted double-buffered) + slack.
    resident = 2 * B * H * x_itemsize + (2 << 20)
    for k in range(H // 128, 0, -1):
        tn = 128 * k
        if H % tn != 0:
            continue
        need = (2 * H * tn * wd_itemsize      # double-buffered weight chunk
                + 4 * tn * wd_itemsize        # double-buffered bias + out_proj rows
                + resident)
        if need <= budget:
            return tn
    return 128


# --------------------------------------------------------------------------- #
# Wrapper
# --------------------------------------------------------------------------- #

def binary_classification_head(features, dense_w, dense_b, out_w, out_b, *,
                               tn=None, num_core_splits=None):
    """features: [B, S, H] -> logits: [B, 1]. Dropout is identity (inference).

    dense_w: [H, H] (in, out);  dense_b: [H];  out_w: [H, 1];  out_b: [1].
    """
    # TODO(synk): dropout is omitted (eval-mode identity); add pltpu PRNG masking
    # if training-mode dropout is ever required.
    B, S, H = features.shape
    assert H % 128 == 0, "hidden size must be a multiple of 128 for the fused CLS slice"
    assert dense_w.shape == (H, H) and dense_b.shape == (H,)
    assert out_w.shape == (H, 1) and out_b.shape == (1,)

    # Fuse the CLS slice: contiguous reshape (no data movement); the x BlockSpec
    # below reads only the first H columns of each row == features[:, 0, :].
    x_flat = features.reshape(B, S * H)
    bd = dense_b.reshape(1, H)
    wo_row = out_w.reshape(1, H)   # (H, 1) -> lane-dense (1, H) row, same data order
    bo = out_b.reshape(1, 1)

    budget = _vmem_budget_bytes()
    if tn is None:
        tn = _choose_tn(H, B, dense_w.dtype.itemsize, features.dtype.itemsize, budget)
    assert H % tn == 0 and tn % 128 == 0, (H, tn)
    vmem_limit = budget  # raised above the 16/32 MiB scoped defaults on v5e/v6e/v7x

    # ---------------- fast path: whole weight resident, single grid step -----
    if tn == H:
        return pl.pallas_call(
            _head_kernel_single,
            out_shape=jax.ShapeDtypeStruct((B, 1), features.dtype),
            grid_spec=pltpu.PrefetchScalarGridSpec(
                num_scalar_prefetch=0,
                grid=(1,),
                in_specs=[
                    pl.BlockSpec((B, H), lambda n: (0, 0)),   # CLS features
                    pl.BlockSpec((H, H), lambda n: (0, 0)),   # full dense weight
                    pl.BlockSpec((1, H), lambda n: (0, 0)),   # dense bias
                    pl.BlockSpec((1, H), lambda n: (0, 0)),   # out_proj row
                    pl.BlockSpec((1, 1), lambda n: (0, 0)),   # out_proj bias
                ],
                out_specs=pl.BlockSpec((B, 1), lambda n: (0, 0)),
            ),
            compiler_params=pltpu.CompilerParams(
                dimension_semantics=("arbitrary",),
                vmem_limit_bytes=vmem_limit,
            ),
        )(x_flat, dense_w, bd, wo_row, bo)

    # ---------------- streaming path: column-chunked weight ------------------
    n_chunks = H // tn
    if num_core_splits is None:
        num_core_splits = _default_core_splits()
    if num_core_splits < 1 or n_chunks % num_core_splits != 0:
        num_core_splits = 1
    steps = n_chunks // num_core_splits

    col_map = lambda c, n: (0, c * steps + n)

    # If profiling ever shows exposed DMA latency at small TN, deepen only the
    # weight stream with pipeline_mode=pl.Buffered(3) on in_specs[1].
    partials = pl.pallas_call(
        _head_kernel_stream,
        out_shape=jax.ShapeDtypeStruct((num_core_splits, B, 1), jnp.float32),
        grid_spec=pltpu.PrefetchScalarGridSpec(
            num_scalar_prefetch=0,
            grid=(num_core_splits, steps),
            in_specs=[
                pl.BlockSpec((B, H), lambda c, n: (0, 0)),   # CLS features, resident
                pl.BlockSpec((H, tn), col_map),              # dense weight chunk
                pl.BlockSpec((1, tn), col_map),              # dense bias chunk
                pl.BlockSpec((1, tn), col_map),              # out_proj weight chunk
            ],
            out_specs=pl.BlockSpec((1, B, 1), lambda c, n: (c, 0, 0)),
            scratch_shapes=[pltpu.VMEM((B, 1), jnp.float32)],
        ),
        compiler_params=pltpu.CompilerParams(
            dimension_semantics=("parallel", "arbitrary"),
            vmem_limit_bytes=vmem_limit,
        ),
    )(x_flat, dense_w, bd, wo_row)

    logits = partials.sum(axis=0) + bo.astype(jnp.float32)
    return logits.astype(features.dtype)


# --------------------------------------------------------------------------- #
# Reference + self-test
# --------------------------------------------------------------------------- #

def _reference(features, dense_w, dense_b, out_w, out_b):
    x = features[:, 0, :]
    h = jnp.tanh(x @ dense_w + dense_b)
    return h @ out_w + out_b


if __name__ == "__main__":
    # Small shapes consistent with the module: batch=2, seq=8, hidden=256
    # (128-aligned hidden so the fused CLS slice applies).
    B, S, H = 2, 8, 256
    key = jax.random.PRNGKey(0)
    k_feat, k_wd, k_bd, k_wo, k_bo = jax.random.split(key, 5)

    features = jax.random.normal(k_feat, (B, S, H), dtype=jnp.float32)

    initializer_range = 0.02  # config.initializer_range
    dense_w = initializer_range * jax.random.normal(k_wd, (H, H), dtype=jnp.float32)
    dense_b = 0.1 * jax.random.normal(k_bd, (H,), dtype=jnp.float32)
    out_w = initializer_range * jax.random.normal(k_wo, (H, 1), dtype=jnp.float32)
    out_b = 0.1 * jax.random.normal(k_bo, (1,), dtype=jnp.float32)

    ref = _reference(features, dense_w, dense_b, out_w, out_b)

    # 1) Auto config: 256x256 weight fits VMEM -> fast single-step path.
    head_auto = jax.jit(binary_classification_head)
    logits = jax.block_until_ready(head_auto(features, dense_w, dense_b, out_w, out_b))
    assert logits.shape == (B, 1), logits.shape
    assert jnp.allclose(logits, ref, atol=1e-4, rtol=1e-4), (logits, ref)

    # 2) Forced streaming path (tn=128) to exercise the accumulator grid.
    head_stream = jax.jit(functools.partial(
        binary_classification_head, tn=128, num_core_splits=1))
    logits_s = jax.block_until_ready(head_stream(features, dense_w, dense_b, out_w, out_b))
    assert jnp.allclose(logits_s, ref, atol=1e-4, rtol=1e-4), (logits_s, ref)

    # 3) Forced 2-way column split (v7x dual-core layout; serial on 1-TC chips).
    head_split = jax.jit(functools.partial(
        binary_classification_head, tn=128, num_core_splits=2))
    logits_p = jax.block_until_ready(head_split(features, dense_w, dense_b, out_w, out_b))
    assert jnp.allclose(logits_p, ref, atol=1e-4, rtol=1e-4), (logits_p, ref)

    print("KERNEL_OK")
</pallas_src>

<mosaic_0001>
module attributes {stable_mosaic.version = 11 : i64} {
  func.func @_head_kernel_single(%arg0: i32, %arg1: memref<2x256xf32, #tpu.memory_space<vmem>>, %arg2: memref<256x256xf32, #tpu.memory_space<vmem>>, %arg3: memref<1x256xf32, #tpu.memory_space<vmem>>, %arg4: memref<1x256xf32, #tpu.memory_space<vmem>>, %arg5: memref<1x1xf32, #tpu.memory_space<vmem>>, %arg6: memref<2x1xf32, #tpu.memory_space<vmem>>) attributes {dimension_semantics = [#tpu.dimension_semantics<arbitrary>], iteration_bounds = array<i64: 1>, scalar_prefetch = 0 : i64, scratch_operands = 0 : i64, tpu.core_type = #tpu.core_type<tc>, window_params = [{transform_indices = @transform_0, window_bounds = array<i64: 2, 256>}, {pipeline_mode = #tpu.pipeline_mode<synchronous>, transform_indices = @transform_1, window_bounds = array<i64: 256, 256>}, {pipeline_mode = #tpu.pipeline_mode<synchronous>, transform_indices = @transform_2, window_bounds = array<i64: 1, 256>}, {pipeline_mode = #tpu.pipeline_mode<synchronous>, transform_indices = @transform_3, window_bounds = array<i64: 1, 256>}, {pipeline_mode = #tpu.pipeline_mode<synchronous>, transform_indices = @transform_4, window_bounds = array<i64: 1, 1>}, {pipeline_mode = #tpu.pipeline_mode<synchronous>, transform_indices = @transform_5, window_bounds = array<i64: 2, 1>}]} {
    %c0 = arith.constant 0 : index
    %c0_0 = arith.constant 0 : index
    %0 = vector.load %arg1[%c0, %c0_0] : memref<2x256xf32, #tpu.memory_space<vmem>>, vector<2x256xf32>
    %c0_1 = arith.constant 0 : index
    %c0_2 = arith.constant 0 : index
    %1 = vector.load %arg2[%c0_1, %c0_2] : memref<256x256xf32, #tpu.memory_space<vmem>>, vector<256x256xf32>
    %cst = arith.constant dense<0.000000e+00> : vector<2x256xf32>
    %2 = tpu.matmul %0, %1, %cst {dimension_numbers = #tpu.dot_dimension_numbers<[1], [0], [0], [1], [0, 0, 1, 1], [], []>} : vector<2x256xf32>, vector<256x256xf32>, vector<2x256xf32> -> vector<2x256xf32>
    %c0_3 = arith.constant 0 : index
    %c0_4 = arith.constant 0 : index
    %3 = vector.load %arg3[%c0_3, %c0_4] : memref<1x256xf32, #tpu.memory_space<vmem>>, vector<1x256xf32>
    %4 = vector.broadcast %3 : vector<1x256xf32> to vector<2x256xf32>
    %5 = arith.addf %2, %4 : vector<2x256xf32>
    %6 = math.tanh %5 : vector<2x256xf32>
    %c0_5 = arith.constant 0 : index
    %c0_6 = arith.constant 0 : index
    %7 = vector.load %arg4[%c0_5, %c0_6] : memref<1x256xf32, #tpu.memory_space<vmem>>, vector<1x256xf32>
    %8 = vector.broadcast %7 : vector<1x256xf32> to vector<2x256xf32>
    %9 = arith.mulf %6, %8 : vector<2x256xf32>
    %cst_7 = arith.constant dense<0.000000e+00> : vector<2xf32>
    %10 = vector.multi_reduction <add>, %9, %cst_7 [1] : vector<2x256xf32> to vector<2xf32>
    %11 = vector.shape_cast %10 : vector<2xf32> to vector<2x1xf32>
    %c0_8 = arith.constant 0 : index
    %c0_9 = arith.constant 0 : index
    %12 = vector.load %arg5[%c0_8, %c0_9] : memref<1x1xf32, #tpu.memory_space<vmem>>, vector<1x1xf32>
    %13 = vector.broadcast %12 : vector<1x1xf32> to vector<2x1xf32>
    %14 = arith.addf %11, %13 : vector<2x1xf32>
    %c0_10 = arith.constant 0 : index
    %c0_11 = arith.constant 0 : index
    %15 = vector.load %arg6[%c0_10, %c0_11] : memref<2x1xf32, #tpu.memory_space<vmem>>, vector<2x1xf32>
    tpu.vector_store %arg6[%c0_10, %c0_11], %14 {strides = array<i32>} : memref<2x1xf32, #tpu.memory_space<vmem>>, vector<2x1xf32>,
    return
  }
  func.func @transform_0(%arg0: i32) -> (i32, i32) {
    %c0_i32 = arith.constant 0 : i32
    %c0_i32_0 = arith.constant 0 : i32
    %c0_i32_1 = arith.constant 0 : i32
    return %c0_i32, %c0_i32_0 : i32, i32
  }
  func.func @transform_1(%arg0: i32) -> (i32, i32) {
    %c0_i32 = arith.constant 0 : i32
    %c0_i32_0 = arith.constant 0 : i32
    %c0_i32_1 = arith.constant 0 : i32
    return %c0_i32, %c0_i32_0 : i32, i32
  }
  func.func @transform_2(%arg0: i32) -> (i32, i32) {
    %c0_i32 = arith.constant 0 : i32
    %c0_i32_0 = arith.constant 0 : i32
    %c0_i32_1 = arith.constant 0 : i32
    return %c0_i32, %c0_i32_0 : i32, i32
  }
  func.func @transform_3(%arg0: i32) -> (i32, i32) {
    %c0_i32 = arith.constant 0 : i32
    %c0_i32_0 = arith.constant 0 : i32
    %c0_i32_1 = arith.constant 0 : i32
    return %c0_i32, %c0_i32_0 : i32, i32
  }
  func.func @transform_4(%arg0: i32) -> (i32, i32) {
    %c0_i32 = arith.constant 0 : i32
    %c0_i32_0 = arith.constant 0 : i32
    %c0_i32_1 = arith.constant 0 : i32
    return %c0_i32, %c0_i32_0 : i32, i32
  }
  func.func @transform_5(%arg0: i32) -> (i32, i32) {
    %c0_i32 = arith.constant 0 : i32
    %c0_i32_0 = arith.constant 0 : i32
    %c0_i32_1 = arith.constant 0 : i32
    return %c0_i32, %c0_i32_0 : i32, i32
  }
}

</mosaic_0001>

<bundles_post_ra>
// kernel: binary_classification_head.1
= control target key start
LH: loop header
LB: loop body
LE: loop exit
PB: predicated region body
PF: predicated region fallthrough
CT: control target
= control target key end

     0   :  { %s583_s0 = inlined_call_operand.hbm [shape: f32[2,2048], index: 0, kind: input, shape index: {}]   ;;  %s584_s1 = inlined_call_operand.hbm [shape: f32[256,256], index: 1, kind: input, shape index: {}]   ;;  %s585_s2 = inlined_call_operand.hbm [shape: f32[1,256], index: 2, kind: input, shape index: {}]   ;;  %s586_s3 = inlined_call_operand.hbm [shape: f32[1,256], index: 3, kind: input, shape index: {}]   ;;  %s587_s4 = inlined_call_operand.<no memory space> [shape: f32[1,1], index: 4, kind: input, shape index: {}]   ;;  %s588_s5 = inlined_call_operand.hbm [shape: f32[2,1], index: 5, kind: output, shape index: {}]  }
   0x1   :  { %v10_v0 = vstv %s587_s4 }
   0x2   :  { %11 = vst [vmem:[#allocation2] sm:$0x1] %v10_v0 }
   0x3   :  { %12 = vsyncpa [#allocation4], 0 }
   0x4   :  { %13 = vsyncpa [#allocation7], 0 }
   0x5   :  { %14 = vsyncpa [#allocation10], 0 }
   0x6   :  { %15 = vsyncpa [#allocation5], 0  ;;  %s475_s20 = smov [#allocation6]   ;;  %s357_s24 = scalar_lea.hbm %s584_s1, 8192 }
   0x7   :  { %s31_s21 = sshll.u32 %s475_s20, 4  ;;  %p358_p0 = scmp.ne.s32.totalorder %s584_s1, %s357_s24  ;;  %s32_s21 = int_to_ptr.vmem [resolvable:$true] %s31_s21 }
   0x8   :  { %p361_p1 = scmp.lt.u32.totalorder %s357_s24, %s584_s1 }
   0xa   :  { %p363_p2 = pnand %p361_p1, %p358_p0 }
   0xc   :  { %366 = shalt.err (!%p363_p2)
}
   0xd   :  { %s367_s4 = scalar_lea.vmem %s32_s21, 8192  ;;  %p372_p4 = scmp.lt.s32.totalorder %s32_s21, %s32_s21 }
   0xe   :  { %p368_p3 = scmp.ne.s32.totalorder %s32_s21, %s367_s4  ;;  %p373_p5 = scmp.lt.s32.totalorder %s367_s4, %s367_s4 }
  0x10   :  { %p374_p6 = por %p373_p5, %p372_p4 }
  0x12   :  { %p375_p7 = pnand %p374_p6, %p368_p3 }
  0x14   :  { %378 = shalt.err (!%p375_p7)
}
  0x15   :  { %s476_s29 = smov 256   ;;  %s477_s30 = smov 16  }
  0x16   :  { %37 = dma.hbm_to_vmem [thread:$0]  %s584_s1, 8192, %s32_s21, [#allocation7], %s476_s29, %s476_s29, %s477_s30  }
  0x17   :  { %s478_s8 = smov [#allocation3]   ;;  %s479_s10 = smov [#allocation8]  }
  0x18   :  { %s22_s9 = sshll.u32 %s478_s8, 4  ;;  %s44_s11 = sshll.u32 %s479_s10, 4  ;;  %s23_s9 = int_to_ptr.vmem [resolvable:$true] %s22_s9  ;;  %s45_s11 = int_to_ptr.vmem [resolvable:$true] %s44_s11 }
  0x19   :  { %s379_s14 = scalar_lea.hbm %s583_s0, 64  ;;  %s381_s19 = scalar_lea.hbm %s583_s0, 512 }
  0x1a   :  { %p380_p8 = scmp.ne.s32.totalorder %s583_s0, %s379_s14  ;;  %p382_p9 = scmp.lt.u32.totalorder %s381_s19, %s379_s14 }
  0x1b   :  { %p383_p10 = scmp.lt.u32.totalorder %s379_s14, %s583_s0 }
  0x1d   :  { %p384_p11 = por %p383_p10, %p382_p9 }
  0x1f   :  { %p385_p12 = pnand %p384_p11, %p380_p8 }
  0x21   :  { %388 = shalt.err (!%p385_p12)
}
  0x22   :  { %s389_s21 = scalar_lea.vmem %s23_s9, 64  ;;  %p394_p0 = scmp.lt.s32.totalorder %s23_s9, %s23_s9 }
  0x23   :  { %p390_p13 = scmp.ne.s32.totalorder %s23_s9, %s389_s21  ;;  %p395_p1 = scmp.lt.s32.totalorder %s389_s21, %s389_s21 }
  0x25   :  { %p396_p2 = por %p395_p1, %p394_p0 }
  0x27   :  { %p397_p3 = pnand %p396_p2, %p390_p13 }
  0x29   :  { %400 = shalt.err (!%p397_p3)
}
  0x2a   :  { %25 = dma.hbm_to_vmem [thread:$0]  %s583_s0, 64, %s23_s9, [#allocation4]  }
  0x2b   :  { %s401_s26 = scalar_lea.hbm %s585_s2, 32 }
  0x2c   :  { %p402_p4 = scmp.ne.s32.totalorder %s585_s2, %s401_s26  ;;  %p405_p5 = scmp.lt.u32.totalorder %s401_s26, %s585_s2 }
  0x2e   :  { %p407_p6 = pnand %p405_p5, %p402_p4 }
  0x30   :  { %410 = shalt.err (!%p407_p6)
}
  0x31   :  { %s411_s30 = scalar_lea.vmem %s45_s11, 32  ;;  %p416_p8 = scmp.lt.s32.totalorder %s45_s11, %s45_s11 }
  0x32   :  { %p412_p7 = scmp.ne.s32.totalorder %s45_s11, %s411_s30  ;;  %p417_p9 = scmp.lt.s32.totalorder %s411_s30, %s411_s30 }
  0x34   :  { %p418_p10 = por %p417_p9, %p416_p8 }
  0x36   :  { %p419_p11 = pnand %p418_p10, %p412_p7 }
  0x38   :  { %422 = shalt.err (!%p419_p11)
}
  0x39   :  { %47 = dma.hbm_to_vmem [thread:$0]  %s585_s2, 32, %s45_s11, [#allocation7]  }
  0x3a   :  { %s480_s7 = smov [#allocation9]   ;;  %s423_s12 = scalar_lea.hbm %s586_s3, 32 }
  0x3b   :  { %s54_s8 = sshll.u32 %s480_s7, 4  ;;  %p424_p12 = scmp.ne.s32.totalorder %s586_s3, %s423_s12  ;;  %s55_s8 = int_to_ptr.vmem [resolvable:$true] %s54_s8 }
  0x3c   :  { %p427_p13 = scmp.lt.u32.totalorder %s423_s12, %s586_s3 }
  0x3e   :  { %p429_p0 = pnand %p427_p13, %p424_p12 }
  0x40   :  { %432 = shalt.err (!%p429_p0)
}
  0x41   :  { %s433_s17 = scalar_lea.vmem %s55_s8, 32  ;;  %p438_p2 = scmp.lt.s32.totalorder %s55_s8, %s55_s8 }
  0x42   :  { %p434_p1 = scmp.ne.s32.totalorder %s55_s8, %s433_s17  ;;  %p439_p3 = scmp.lt.s32.totalorder %s433_s17, %s433_s17 }
  0x44   :  { %p440_p4 = por %p439_p3, %p438_p2 }
  0x46   :  { %p441_p5 = pnand %p440_p4, %p434_p1 }
  0x48   :  { %444 = shalt.err (!%p441_p5)
}
  0x49   :  { %57 = dma.hbm_to_vmem [thread:$0]  %s586_s3, 32, %s55_s8, [#allocation10]  }
  0x4a   :  { %467 = dma.done.wait [#allocation4], 64  }
  0x4b   :  { %468 = vsyncadd [#allocation4], 4294967232 }
  0x4c   :  { %469 = dma.done.wait [#allocation7], 8224  }
  0x4d   :  { %470 = vsyncadd [#allocation7], 4294959072 }
  0x4e   :  { %471 = dma.done.wait [#allocation10], 32  }
  0x4f   :  { %472 = vsyncadd [#allocation10], 4294967264  ;;  %v74_v1 = vld [vmem:[#allocation6 + $0x8] sm:$0xff]  ;;  %v76_v2 = vld [vmem:[#allocation6 + $0x18] sm:$0xff]  ;;  %vm247_vm0 = vcmask 1041408   ;;  %s481_s3 = smov [#allocation11]  }
  0x50   :  { %v73_v3 = vld [vmem:[#allocation6] sm:$0xff]  ;;  %v282_v4 = vpack.c.bf16 %v76_v2, %v74_v1  ;;  %v75_v5 = vld [vmem:[#allocation6 + $0x10] sm:$0xff]  ;;  %v78_v6 = vld [vmem:[#allocation6 + $0x28] sm:$0xff]  ;;  %s269_s18 = sshll.u32 %s481_s3, 4  ;;  %vm261_vm1 = vcmask 1024   ;;  %s270_s18 = int_to_ptr.vmem [resolvable:$true] %s269_s18 }
  0x51   :  { %v80_v7 = vld [vmem:[#allocation6 + $0x38] sm:$0xff]  ;;  %v284_v8 = vpack.c.bf16 %v75_v5, %v73_v3  ;;  %v77_v10 = vld [vmem:[#allocation6 + $0x20] sm:$0xff]  ;;  %v79_v11 = vld [vmem:[#allocation6 + $0x30] sm:$0xff]  ;;  %s445_s19 = scalar_lea.vmem %s270_s18, 32  ;;  %p450_p7 = scmp.lt.s32.totalorder %s270_s18, %s270_s18 }
  0x52   :  { %v286_v9 = vpack.c.bf16 %v80_v7, %v78_v6  ;;  %v82_v12 = vld [vmem:[#allocation6 + $0x48] sm:$0xff]  ;;  %283 = vmatprep.subr.bf16.mxu0 %v282_v4  ;;  %v84_v13 = vld [vmem:[#allocation6 + $0x58] sm:$0xff]  ;;  %v288_v14 = vpack.c.bf16 %v79_v11, %v77_v10  ;;  %v81_v16 = vld [vmem:[#allocation6 + $0x40] sm:$0xff]  ;;  %p446_p6 = scmp.ne.s32.totalorder %s270_s18, %s445_s19  ;;  %p451_p8 = scmp.lt.s32.totalorder %s445_s19, %s445_s19 }
  0x53   :  { %285 = vmatpush1.bf16.msra.mxu0 %v284_v8  ;;  %v290_v15 = vpack.c.bf16 %v84_v13, %v82_v12  ;;  %v83_v17 = vld [vmem:[#allocation6 + $0x50] sm:$0xff]  ;;  %v86_v18 = vld [vmem:[#allocation6 + $0x68] sm:$0xff]  ;;  %v88_v19 = vld [vmem:[#allocation6 + $0x78] sm:$0xff] }
  0x54   :  { %287 = vmatprep.subr.bf16.mxu0 %v286_v9  ;;  %v292_v20 = vpack.c.bf16 %v83_v17, %v81_v16  ;;  %v294_v21 = vpack.c.bf16 %v88_v19, %v86_v18  ;;  %v85_v22 = vld [vmem:[#allocation6 + $0x60] sm:$0xff]  ;;  %v87_v23 = vld [vmem:[#allocation6 + $0x70] sm:$0xff]  ;;  %v90_v24 = vld [vmem:[#allocation6 + $0x88] sm:$0xff]  ;;  %p452_p9 = por %p451_p8, %p450_p7 }
  0x55   :  { %v92_v25 = vld [vmem:[#allocation6 + $0x98] sm:$0xff]  ;;  %v296_v26 = vpack.c.bf16 %v87_v23, %v85_v22  ;;  %v89_v28 = vld [vmem:[#allocation6 + $0x80] sm:$0xff]  ;;  %v91_v29 = vld [vmem:[#allocation6 + $0x90] sm:$0xff] }
  0x56   :  { %v298_v27 = vpack.c.bf16 %v92_v25, %v90_v24  ;;  %v94_v30 = vld [vmem:[#allocation6 + $0xa8] sm:$0xff]  ;;  %v96_v31 = vld [vmem:[#allocation6 + $0xb8] sm:$0xff]  ;;  %v300_v32 = vpack.c.bf16 %v91_v29, %v89_v28  ;;  %v93_v34 = vld [vmem:[#allocation6 + $0xa0] sm:$0xff]  ;;  %p453_p10 = pnand %p452_p9, %p446_p6 }
  0x57   :  { %289 = vmatpush1.bf16.msra.mxu0 %v288_v14  ;;  %v302_v33 = vpack.c.bf16 %v96_v31, %v94_v30  ;;  %v95_v35 = vld [vmem:[#allocation6 + $0xb0] sm:$0xff]  ;;  %v98_v36 = vld [vmem:[#allocation6 + $0xc8] sm:$0xff]  ;;  %v100_v37 = vld [vmem:[#allocation6 + $0xd8] sm:$0xff] }
  0x58   :  { %291 = vmatprep.subr.bf16.mxu0 %v290_v15  ;;  %v304_v38 = vpack.c.bf16 %v95_v35, %v93_v34  ;;  %v306_v39 = vpack.c.bf16 %v100_v37, %v98_v36  ;;  %v97_v40 = vld [vmem:[#allocation6 + $0xc0] sm:$0xff]  ;;  %v99_v41 = vld [vmem:[#allocation6 + $0xd0] sm:$0xff]  ;;  %v566_v42 = vld.sshfl [vmem:[#allocation3] sm:$0x33 pattern:$0x76325410]  ;;  %v139_v35 = vlaneseq }
  0x59   :  { %v102_v43 = vld [vmem:[#allocation6 + $0xe8] sm:$0xff]  ;;  %v104_v44 = vld [vmem:[#allocation6 + $0xf8] sm:$0xff]  ;;  %v157_v45 = vcombine.high %v566_v42, %v566_v42  ;;  %v308_v46 = vpack.c.bf16 %v99_v41, %v97_v40  ;;  %v101_v48 = vld [vmem:[#allocation6 + $0xe0] sm:$0xff] }
  0x5a   :  { %v310_v47 = vpack.c.bf16 %v104_v44, %v102_v43  ;;  %v103_v49 = vld [vmem:[#allocation6 + $0xf0] sm:$0xff]  ;;  %v106_v50 = vld [vmem:[#allocation6 + $0x108] sm:$0xff]  ;;  %v108_v51 = vld [vmem:[#allocation6 + $0x118] sm:$0xff]  ;;  %v140_v36 = vshrl.u32 %v139_v35, 7 }
  0x5b   :  { %293 = vmatpush1.bf16.msra.mxu0 %v292_v20  ;;  %224 = vmatprep.mubr.f32.mxu0 %v157_v45  ;;  %v312_v52 = vpack.c.bf16 %v103_v49, %v101_v48  ;;  %v314_v53 = vpack.c.bf16 %v108_v51, %v106_v50  ;;  %v105_v54 = vld [vmem:[#allocation6 + $0x100] sm:$0xff]  ;;  %v107_v55 = vld [vmem:[#allocation6 + $0x110] sm:$0xff]  ;;  %v110_v56 = vld [vmem:[#allocation6 + $0x128] sm:$0xff] }
  0x5c   :  { %295 = vmatprep.subr.bf16.mxu0 %v294_v21  ;;  %v112_v57 = vld [vmem:[#allocation6 + $0x138] sm:$0xff]  ;;  %v316_v58 = vpack.c.bf16 %v107_v55, %v105_v54  ;;  %v109_v60 = vld [vmem:[#allocation6 + $0x120] sm:$0xff]  ;;  %v111_v61 = vld [vmem:[#allocation6 + $0x130] sm:$0xff]  ;;  %v141_v37 = vsub.s32 0, %v140_v36 }
  0x5d   :  { %v318_v59 = vpack.c.bf16 %v112_v57, %v110_v56  ;;  %v114_v62 = vld [vmem:[#allocation6 + $0x148] sm:$0xff]  ;;  %v116_v63 = vld [vmem:[#allocation6 + $0x158] sm:$0xff]  ;;  %v320_v0 = vpack.c.bf16 %v111_v61, %v109_v60  ;;  %v113_v2 = vld [vmem:[#allocation6 + $0x140] sm:$0xff] }
  0x5e   :  { %v322_v1 = vpack.c.bf16 %v116_v63, %v114_v62  ;;  %v115_v3 = vld [vmem:[#allocation6 + $0x150] sm:$0xff]  ;;  %v118_v4 = vld [vmem:[#allocation6 + $0x168] sm:$0xff]  ;;  %v120_v5 = vld [vmem:[#allocation6 + $0x178] sm:$0xff] }
  0x5f   :  { %297 = vmatpush1.bf16.msra.mxu0 %v296_v26  ;;  %v324_v6 = vpack.c.bf16 %v115_v3, %v113_v2  ;;  %v326_v7 = vpack.c.bf16 %v120_v5, %v118_v4  ;;  %v117_v8 = vld [vmem:[#allocation6 + $0x160] sm:$0xff]  ;;  %v119_v9 = vld [vmem:[#allocation6 + $0x170] sm:$0xff]  ;;  %v122_v10 = vld [vmem:[#allocation6 + $0x188] sm:$0xff] }
  0x60   :  { %299 = vmatprep.subr.bf16.mxu0 %v298_v27  ;;  %v124_v11 = vld [vmem:[#allocation6 + $0x198] sm:$0xff]  ;;  %v328_v12 = vpack.c.bf16 %v119_v9, %v117_v8  ;;  %v121_v14 = vld [vmem:[#allocation6 + $0x180] sm:$0xff]  ;;  %v123_v15 = vld [vmem:[#allocation6 + $0x190] sm:$0xff] }
  0x61   :  { %v330_v13 = vpack.c.bf16 %v124_v11, %v122_v10  ;;  %v126_v16 = vld [vmem:[#allocation6 + $0x1a8] sm:$0xff]  ;;  %v128_v17 = vld [vmem:[#allocation6 + $0x1b8] sm:$0xff]  ;;  %v332_v18 = vpack.c.bf16 %v123_v15, %v121_v14  ;;  %v125_v20 = vld [vmem:[#allocation6 + $0x1a0] sm:$0xff] }
  0x62   :  { %v334_v19 = vpack.c.bf16 %v128_v17, %v126_v16  ;;  %v127_v21 = vld [vmem:[#allocation6 + $0x1b0] sm:$0xff]  ;;  %v130_v22 = vld [vmem:[#allocation6 + $0x1c8] sm:$0xff]  ;;  %v132_v23 = vld [vmem:[#allocation6 + $0x1d8] sm:$0xff] }
  0x63   :  { %301 = vmatpush1.bf16.msra.mxu0 %v300_v32  ;;  %v336_v24 = vpack.c.bf16 %v127_v21, %v125_v20  ;;  %v338_v25 = vpack.c.bf16 %v132_v23, %v130_v22  ;;  %v129_v26 = vld [vmem:[#allocation6 + $0x1c0] sm:$0xff]  ;;  %v131_v27 = vld [vmem:[#allocation6 + $0x1d0] sm:$0xff]  ;;  %v134_v28 = vld [vmem:[#allocation6 + $0x1e8] sm:$0xff] }
  0x64   :  { %303 = vmatprep.subr.bf16.mxu0 %v302_v33  ;;  %v136_v29 = vld [vmem:[#allocation6 + $0x1f8] sm:$0xff]  ;;  %v340_v30 = vpack.c.bf16 %v131_v27, %v129_v26  ;;  %v133_v32 = vld [vmem:[#allocation6 + $0x1e0] sm:$0xff]  ;;  %v135_v33 = vld [vmem:[#allocation6 + $0x1f0] sm:$0xff] }
  0x65   :  { %v342_v31 = vpack.c.bf16 %v136_v29, %v134_v28  ;;  %v344_v34 = vpack.c.bf16 %v135_v33, %v133_v32  ;;  %v281_v56 = vld [vmem:[#allocation2] ss:$0 sm:$0xff] }
  0x67   :  { %305 = vmatpush1.bf16.msra.mxu0 %v304_v38  ;;  %v137_v38 = vld [vmem:[#allocation8] sm:$0x3] }
  0x68   :  { %307 = vmatprep.subr.bf16.mxu0 %v306_v39  ;;  %v145_v39 = vsub.s32 1, %v140_v36  ;;  %v142_v40 = vrot.slane %v137_v38, %v141_v37 }
  0x6a   :  { %v146_v41 = vrot.slane %v137_v38, %v145_v39 }
  0x6b   :  { %309 = vmatpush1.bf16.msra.mxu0 %v308_v46 }
  0x6c   :  { %311 = vmatprep.subr.bf16.mxu0 %v310_v47  ;;  %v233_v47 = vld [vmem:[#allocation9] sm:$0x3] }
  0x6d   :  { %v238_v48 = vrot.slane %v233_v47, %v141_v37  ;;  %v242_v49 = vrot.slane %v233_v47, %v145_v39 }
  0x6f   :  { %313 = vmatpush1.bf16.msra.mxu0 %v312_v52 }
  0x70   :  { %315 = vmatprep.subr.bf16.mxu0 %v314_v53 }
  0x73   :  { %317 = vmatpush1.bf16.msra.mxu0 %v316_v58 }
  0x74   :  { %319 = vmatprep.subr.bf16.mxu0 %v318_v59 }
  0x77   :  { %321 = vmatpush1.bf16.msra.mxu0 %v320_v0 }
  0x78   :  { %323 = vmatprep.subr.bf16.mxu0 %v322_v1 }
  0x7b   :  { %325 = vmatpush1.bf16.msra.mxu0 %v324_v6 }
  0x7c   :  { %327 = vmatprep.subr.bf16.mxu0 %v326_v7 }
  0x7f   :  { %329 = vmatpush1.bf16.msra.mxu0 %v328_v12 }
  0x80   :  { %331 = vmatprep.subr.bf16.mxu0 %v330_v13 }
  0x83   :  { %333 = vmatpush1.bf16.msra.mxu0 %v332_v18 }
  0x84   :  { %335 = vmatprep.subr.bf16.mxu0 %v334_v19 }
  0x87   :  { %337 = vmatpush1.bf16.msra.mxu0 %v336_v24 }
  0x88   :  { %339 = vmatprep.subr.bf16.mxu0 %v338_v25 }
  0x8b   :  { %341 = vmatpush1.bf16.msra.mxu0 %v340_v30 }
  0x8c   :  { %343 = vmatprep.subr.bf16.mxu0 %v342_v31 }
  0x8f   :  { %345 = vmatpush1.bf16.msra.mxu0 %v344_v34 }
  0x92   :  { %225 = vmatmul.mubr.f32.vlgmr.msra.gmra.mrb[0].mxu0 %v566_v42 }
 0x165   :  { %v226_v43 = vpop.f32.mrb[0].mxu0 }
 0x166   :  { %v227_v44 = vadd.f32 %v226_v43, %v142_v40  ;;  %v228_v45 = vpop.f32.mrb[1].mxu0 }
 0x167   :  { %v229_v46 = vadd.f32 %v228_v45, %v146_v41 }
 0x168   :  { %353 = vtanh.f32 %v227_v44 }
 0x169   :  { %355 = vtanh.f32 %v229_v46 }
 0x172   :  { %v354_v50 = vpop.eup %353 }
 0x173   :  { %v356_v51 = vpop.eup %355  ;;  %v245_v42 = vmul.f32 %v354_v50, %v238_v48 }
 0x174   :  { %v246_v52 = vmul.f32 %v356_v51, %v242_v49 }
 0x175   :  { %v248_v53 = vsel %vm247_vm0, %v245_v42, 0.0 }
 0x176   :  { %v249_v54 = vsel %vm247_vm0, %v246_v52, 0.0 }
 0x177   :  { %v250_v55 = vadd.f32 %v249_v54, %v248_v53 }
 0x179   :  { %251 = vadd.xlane.f32.xlu0 %v250_v55 }
 0x206   :  { %v252_v57 = vpop.xlane.xlu0 %251 }
 0x207   :  { %v260_v58 = vadd.f32 %v281_v56, %v252_v57 }
 0x209   :  { %262 = vst.msk [vmem:[#allocation11] sm:$0x3] %vm261_vm1, %v260_v58 }
 0x20a   :  { %456 = shalt.err (!%p453_p10)
}
 0x20b   :  { %s457_s21 = scalar_lea.hbm %s588_s5, 32 }
 0x20c   :  { %p458_p11 = scmp.ne.s32.totalorder %s588_s5, %s457_s21  ;;  %p461_p12 = scmp.lt.u32.totalorder %s457_s21, %s588_s5 }
 0x20e   :  { %p463_p13 = pnand %p461_p12, %p458_p11 }
 0x210   :  { %466 = shalt.err (!%p463_p13)
}
 0x211   :  { %272 = dma.vmem_to_hbm [thread:$0]  %s270_s18, 32, %s588_s5, [#allocation5]  }
 0x212   :  { %473 = dma.done.wait [#allocation5], 32  }
 0x213   :  { %474 = vsyncadd [#allocation5], 4294967264 }
 0x214   :  { %276 = vsyncpa [#allocation4], 1 }
 0x215   :  { %277 = vsyncpa [#allocation7], 1 }
 0x216   :  { %278 = vsyncpa [#allocation10], 1 }
 0x217   :  { %279 = vsyncpa [#allocation5], 1 }

</bundles_post_ra>
